<compile_context>
chip_gen: v7x
topology: tpu7x:2x2x1
jax: 0.10.0
libtpu: 0.0.40
codegen_flags: <defaults>
</compile_context>

<pallas_src>
import functools
import math

import jax
import jax.numpy as jnp
from jax import lax
from jax.experimental import pallas as pl
from jax.experimental.pallas import tpu as pltpu


# ----------------------------------------------------------------------------
# Pallas kernels
# ----------------------------------------------------------------------------

def _conv_relu_kernel(p_ref, w_ref, b_ref, o_ref, *, batch):
    """Transposed conv-as-matmul: per batch  o[b] = relu(W @ p[b] + bias).

    p_ref: (B, K, N)   (patch features x pixels, pixels on lanes)
    w_ref: (M, K)      (C_out x C_in*k*k)
    b_ref: (M, 1)
    o_ref: (B, M, N)   lane-dense output (long spatial axis on lanes)
    """
    w = w_ref[...]
    bias = b_ref[...]
    for i in range(batch):                                  # static unroll (B=2)
        y = jnp.dot(w, p_ref[i], preferred_element_type=jnp.float32) + bias
        o_ref[i] = jnp.maximum(y, 0.0).astype(o_ref.dtype)


def conv_relu_t(p, w, b):
    """p: (B, K, N), w: (M, K), b: (M, 1) -> (B, M, N). Single gridless call."""
    B, K, N = p.shape
    M = w.shape[0]
    return pl.pallas_call(
        functools.partial(_conv_relu_kernel, batch=B),
        out_shape=jax.ShapeDtypeStruct((B, M, N), jnp.float32),
    )(p, w, b)


def _transformer_kernel(x_ref, wqkv_ref, bqkv_ref, wo_ref, bo_ref,
                        n1w_ref, n1b_ref, n2w_ref, n2b_ref,
                        w1_ref, b1_ref, w2_ref, b2_ref,
                        nw_ref, nb_ref, wap_ref, bap_ref,
                        wc1_ref, bc1_ref, wc2_ref, bc2_ref,
                        o_ref, *, n_layers, n_heads, batch, seq):
    """All encoder layers + final LN + attention pool + classifier, fused.

    x_ref: (B*S, d).  Per-layer weights are stacked with a leading layer axis.
    """
    x = x_ref[...].astype(jnp.float32)                      # (B*S, d)
    d = x.shape[-1]
    scale = float(d) ** (-0.5)                              # q.size(-1)**-0.5 == d_model

    def ln(v, w, b):
        mu = jnp.mean(v, axis=-1, keepdims=True)
        var = jnp.mean((v - mu) ** 2, axis=-1, keepdims=True)
        return (v - mu) * lax.rsqrt(var + 1e-5) * w + b

    for l in range(n_layers):                               # static unroll (L=2)
        # ---- multi-head attention (each head uses full d_model, like torch) --
        xn = ln(x, n1w_ref[l], n1b_ref[l])
        # fused Q/K/V projection for all heads & whole batch: one MXU matmul
        qkv = jnp.dot(xn, wqkv_ref[l],
                      preferred_element_type=jnp.float32) + bqkv_ref[l]   # (B*S, 3*H*d)
        attn_rows = []
        for b in range(batch):                              # attention mixes rows within one item
            qkv_b = qkv[b * seq:(b + 1) * seq]              # (S, 3*H*d)
            head_outs = []
            for h in range(n_heads):
                q = qkv_b[:, (3 * h + 0) * d:(3 * h + 1) * d]
                k = qkv_b[:, (3 * h + 1) * d:(3 * h + 2) * d]
                v = qkv_b[:, (3 * h + 2) * d:(3 * h + 3) * d]
                s = lax.dot_general(q, k, (((1,), (1,)), ((), ())),
                                    preferred_element_type=jnp.float32) * scale
                s = s - jnp.max(s, axis=-1, keepdims=True)
                p = jnp.exp(s)
                p = p * pl.reciprocal(jnp.sum(p, axis=-1, keepdims=True), approx=True)
                head_outs.append(jnp.dot(p, v, preferred_element_type=jnp.float32))
            attn_rows.append(jnp.concatenate(head_outs, axis=-1))        # (S, H*d)
        attn_cat = jnp.concatenate(attn_rows, axis=0)                    # (B*S, H*d)
        # single output projection over the concatenated heads
        x = x + jnp.dot(attn_cat, wo_ref[l],
                        preferred_element_type=jnp.float32) + bo_ref[l]  # dropout_1 = id (eval)

        # ---- feed forward ----------------------------------------------------
        xn2 = ln(x, n2w_ref[l], n2b_ref[l])
        h1 = jnp.maximum(jnp.dot(xn2, w1_ref[l],
                                 preferred_element_type=jnp.float32) + b1_ref[l], 0.0)
        x = x + jnp.dot(h1, w2_ref[l],
                        preferred_element_type=jnp.float32) + b2_ref[l]  # dropout_2 = id (eval)

    # ---- final LayerNorm + attention pooling + classifier --------------------
    xn = ln(x, nw_ref[...], nb_ref[...])                     # (B*S, d)
    logit = jnp.sum(xn * wap_ref[...], axis=-1, keepdims=True) + bap_ref[...]   # (B*S, 1)
    pooled_rows = []
    for b in range(batch):                                   # softmax over sequence, per item
        lb = logit[b * seq:(b + 1) * seq]
        xb = xn[b * seq:(b + 1) * seq]
        lb = lb - jnp.max(lb, axis=0, keepdims=True)
        e = jnp.exp(lb)
        sm = e * pl.reciprocal(jnp.sum(e, axis=0, keepdims=True), approx=True)
        pooled_rows.append(jnp.sum(sm * xb, axis=0, keepdims=True))      # (1, d)
    pooled = jnp.concatenate(pooled_rows, axis=0)            # (B, d)  -> batched classifier
    h = jnp.maximum(jnp.dot(pooled, wc1_ref[...],
                            preferred_element_type=jnp.float32) + bc1_ref[...], 0.0)
    out = jnp.dot(h, wc2_ref[...], preferred_element_type=jnp.float32) + bc2_ref[...]
    o_ref[...] = out.astype(o_ref.dtype)


def transformer_fused(x2d, p, n_heads, batch, seq):
    """x2d: (B*S, d) -> logits (B, n_classes). One gridless, VMEM-resident call."""
    n_classes = p["wc2"].shape[1]
    n_layers = p["wqkv"].shape[0]
    kern = functools.partial(_transformer_kernel, n_layers=n_layers,
                             n_heads=n_heads, batch=batch, seq=seq)
    return pl.pallas_call(
        kern,
        out_shape=jax.ShapeDtypeStruct((batch, n_classes), jnp.float32),
    )(x2d, p["wqkv"], p["bqkv"], p["wo"], p["bo"],
      p["n1w"], p["n1b"], p["n2w"], p["n2b"],
      p["w1"], p["b1"], p["w2"], p["b2"],
      p["norm_w"], p["norm_b"], p["wap"], p["bap"],
      p["wc1"], p["bc1"], p["wc2"], p["bc2"])


# ----------------------------------------------------------------------------
# Plain-JAX layout glue (slices/reshapes only; no gathers)
# ----------------------------------------------------------------------------

def im2col_t(x, k, s):
    """NCHW -> (B, C*k*k, OH*OW); feature axis ordered (C, kh, kw) like torch.

    Built from strided lax.slice calls (no gather / advanced indexing).
    """
    B, C, H, W = x.shape
    OH = (H - k) // s + 1
    OW = (W - k) // s + 1
    cols = []
    for kh in range(k):
        for kw in range(k):
            sl = lax.slice(x, (0, 0, kh, kw),
                           (B, C, kh + (OH - 1) * s + 1, kw + (OW - 1) * s + 1),
                           (1, 1, s, s))                     # (B, C, OH, OW)
            cols.append(sl.reshape(B, C, OH * OW))
    p = jnp.stack(cols, axis=2)                              # (B, C, k*k, OH*OW)
    return p.reshape(B, C * k * k, OH * OW), OH, OW


def maxpool2(x):
    """MaxPool2d(kernel_size=2) on NCHW."""
    B, C, H, W = x.shape
    H2, W2 = H // 2, W // 2
    x = x[:, :, :H2 * 2, :W2 * 2].reshape(B, C, H2, 2, W2, 2)
    return x.max(axis=(3, 5))


def forward_pallas(x_img, params, n_heads):
    B = x_img.shape[0]
    # embed: Conv2d(3,16,k4,s2)+ReLU -> Conv2d(16,d,k4,s2)+ReLU -> MaxPool2 -> Flatten
    p1, oh1, ow1 = im2col_t(x_img, 4, 2)                     # (B, 48, 225)
    c1 = conv_relu_t(p1, params["conv1_w"], params["conv1_b"])   # (B, 16, 225) lane-dense
    c1 = c1.reshape(B, params["conv1_w"].shape[0], oh1, ow1)     # NCHW, no transpose
    p2, oh2, ow2 = im2col_t(c1, 4, 2)                        # (B, 256, 36)
    c2 = conv_relu_t(p2, params["conv2_w"], params["conv2_b"])   # (B, d, 36)
    d_model = params["conv2_w"].shape[0]
    c2 = c2.reshape(B, d_model, oh2, ow2)
    m = maxpool2(c2)                                         # (B, d, 3, 3)
    S = m.shape[2] * m.shape[3]
    # Flatten(start_dim=2) + transpose(-2,-1), then flatten batch*seq for the kernel
    x = m.reshape(B, d_model, S).transpose(0, 2, 1).reshape(B * S, d_model)
    return transformer_fused(x, params, n_heads, batch=B, seq=S)


# ----------------------------------------------------------------------------
# Deterministic parameter init (PyTorch default Kaiming-uniform-style bounds)
# ----------------------------------------------------------------------------

def torch_linear_init(key, fan_in, fan_out):
    kb, kw = jax.random.split(key)
    bound = 1.0 / math.sqrt(fan_in)
    w = jax.random.uniform(kw, (fan_in, fan_out), jnp.float32, -bound, bound)
    b = jax.random.uniform(kb, (1, fan_out), jnp.float32, -bound, bound)
    return w, b


def init_encoder_layer(key, d, n_heads, d_ff):
    ks = iter(jax.random.split(key, 3 * n_heads + 3))
    qkv_w, qkv_b = [], []
    for _ in range(n_heads):                   # per-head column order: [q | k | v]
        for _ in range(3):
            w, b = torch_linear_init(next(ks), d, d)
            qkv_w.append(w)
            qkv_b.append(b)
    wqkv = jnp.concatenate(qkv_w, axis=1)      # (d, 3*H*d)
    bqkv = jnp.concatenate(qkv_b, axis=1)      # (1, 3*H*d)
    wo, bo = torch_linear_init(next(ks), n_heads * d, d)     # (H*d, d), (1, d)
    w1, b1 = torch_linear_init(next(ks), d, d_ff)
    w2, b2 = torch_linear_init(next(ks), d_ff, d)
    return dict(wqkv=wqkv, bqkv=bqkv, wo=wo, bo=bo,
                n1w=jnp.ones((1, d)), n1b=jnp.zeros((1, d)),
                n2w=jnp.ones((1, d)), n2b=jnp.zeros((1, d)),
                w1=w1, b1=b1, w2=w2, b2=b2)


def init_params(key, n_channels, d_model, n_heads, n_layers, n_classes, patch=4):
    ks = iter(jax.random.split(key, 5 + n_layers))
    c1w, c1b = torch_linear_init(next(ks), n_channels * patch * patch, 16)
    c2w, c2b = torch_linear_init(next(ks), 16 * patch * patch, d_model)
    layers = [init_encoder_layer(next(ks), d_model, n_heads, d_model * 2)
              for _ in range(n_layers)]
    wap, bap = torch_linear_init(next(ks), d_model, 1)       # (d,1), (1,1)
    wc1, bc1 = torch_linear_init(next(ks), d_model, d_model)
    wc2, bc2 = torch_linear_init(next(ks), d_model, n_classes)
    stacked = {k: jnp.stack([lp[k] for lp in layers]) for k in layers[0]}
    return dict(conv1_w=c1w.T, conv1_b=c1b.T,                # (16,48), (16,1)
                conv2_w=c2w.T, conv2_b=c2b.T,                # (d,256), (d,1)
                **stacked,
                norm_w=jnp.ones((1, d_model)), norm_b=jnp.zeros((1, d_model)),
                wap=wap.T, bap=bap,                          # (1,d), (1,1)
                wc1=wc1, bc1=bc1, wc2=wc2, bc2=bc2)


# ----------------------------------------------------------------------------
# Pure-JAX reference (same math, no Pallas) for the correctness check
# ----------------------------------------------------------------------------

def forward_ref(x_img, params, n_heads):
    B = x_img.shape[0]

    def conv(x, w, b):                                       # w: (Cout, Cin*k*k), b: (Cout,1)
        p, oh, ow = im2col_t(x, 4, 2)
        y = jnp.maximum(jnp.einsum("mk,bkn->bmn", w, p) + b[None], 0.0)
        return y.reshape(B, w.shape[0], oh, ow)

    def ln(v, w, b):
        mu = v.mean(-1, keepdims=True)
        var = ((v - mu) ** 2).mean(-1, keepdims=True)
        return (v - mu) / jnp.sqrt(var + 1e-5) * w + b

    c1 = conv(x_img, params["conv1_w"], params["conv1_b"])
    c2 = conv(c1, params["conv2_w"], params["conv2_b"])
    d = c2.shape[1]
    x = maxpool2(c2).reshape(B, d, -1).transpose(0, 2, 1)    # (B, S, d)
    n_layers = params["wqkv"].shape[0]
    for l in range(n_layers):
        xn = ln(x, params["n1w"][l], params["n1b"][l])
        heads = []
        for h in range(n_heads):
            wq = params["wqkv"][l][:, (3 * h + 0) * d:(3 * h + 1) * d]
            wk = params["wqkv"][l][:, (3 * h + 1) * d:(3 * h + 2) * d]
            wv = params["wqkv"][l][:, (3 * h + 2) * d:(3 * h + 3) * d]
            bq = params["bqkv"][l][:, (3 * h + 0) * d:(3 * h + 1) * d]
            bk = params["bqkv"][l][:, (3 * h + 1) * d:(3 * h + 2) * d]
            bv = params["bqkv"][l][:, (3 * h + 2) * d:(3 * h + 3) * d]
            q = xn @ wq + bq
            k = xn @ wk + bk
            v = xn @ wv + bv
            s = jax.nn.softmax(jnp.einsum("bqd,bkd->bqk", q, k) * (d ** -0.5), axis=-1)
            heads.append(jnp.einsum("bqk,bkd->bqd", s, v))
        attn = jnp.concatenate(heads, axis=-1) @ params["wo"][l] + params["bo"][l]
        x = x + attn
        xn2 = ln(x, params["n2w"][l], params["n2b"][l])
        x = x + jnp.maximum(xn2 @ params["w1"][l] + params["b1"][l], 0.0) @ params["w2"][l] + params["b2"][l]
    x = ln(x, params["norm_w"], params["norm_b"])
    pool = jax.nn.softmax(jnp.sum(x * params["wap"], -1, keepdims=True) + params["bap"], axis=1)
    pooled = jnp.sum(pool * x, axis=1)
    h = jnp.maximum(pooled @ params["wc1"] + params["bc1"], 0.0)
    return h @ params["wc2"] + params["bc2"]


# ----------------------------------------------------------------------------

if __name__ == "__main__":
    B, C, H, W = 2, 3, 32, 32
    d_model, n_heads, n_layers, n_classes = 32, 2, 2, 10

    key = jax.random.PRNGKey(0)
    kx, kp = jax.random.split(key)
    x_img = jax.random.normal(kx, (B, C, H, W), jnp.float32)
    params = init_params(kp, C, d_model, n_heads, n_layers, n_classes)

    out = jax.block_until_ready(forward_pallas(x_img, params, n_heads))
    ref = forward_ref(x_img, params, n_heads)

    assert out.shape == (B, n_classes), out.shape
    assert bool(jnp.all(jnp.isfinite(out)))
    # Slightly looser tolerance than pure-f32 because the kernel's softmax uses
    # the EUP approximate reciprocal (pl.reciprocal(approx=True)).
    assert bool(jnp.allclose(out, ref, atol=5e-3, rtol=5e-3)), (out, ref)
    print("KERNEL_OK")
</pallas_src>

<mosaic_0001>
module attributes {stable_mosaic.version = 11 : i64} {
  func.func @_conv_relu_kernel(%arg0: memref<2x48x225xf32, #tpu.memory_space<vmem>>, %arg1: memref<16x48xf32, #tpu.memory_space<vmem>>, %arg2: memref<16x1xf32, #tpu.memory_space<vmem>>, %arg3: memref<2x16x225xf32, #tpu.memory_space<vmem>>) attributes {dimension_semantics = [], scalar_prefetch = 0 : i64, scratch_operands = 0 : i64, tpu.core_type = #tpu.core_type<tc>} {
    %c0 = arith.constant 0 : index
    %c0_0 = arith.constant 0 : index
    %0 = vector.load %arg1[%c0, %c0_0] : memref<16x48xf32, #tpu.memory_space<vmem>>, vector<16x48xf32>
    %c0_1 = arith.constant 0 : index
    %c0_2 = arith.constant 0 : index
    %1 = vector.load %arg2[%c0_1, %c0_2] : memref<16x1xf32, #tpu.memory_space<vmem>>, vector<16x1xf32>
    %c0_3 = arith.constant 0 : index
    %c0_4 = arith.constant 0 : index
    %c0_5 = arith.constant 0 : index
    %2 = vector.load %arg0[%c0_3, %c0_4, %c0_5] : memref<2x48x225xf32, #tpu.memory_space<vmem>>, vector<1x48x225xf32>
    %3 = vector.shape_cast %2 : vector<1x48x225xf32> to vector<48x225xf32>
    %cst = arith.constant dense<0.000000e+00> : vector<16x225xf32>
    %4 = tpu.matmul %0, %3, %cst {dimension_numbers = #tpu.dot_dimension_numbers<[1], [0], [0], [1], [0, 0, 1, 1], [], []>} : vector<16x48xf32>, vector<48x225xf32>, vector<16x225xf32> -> vector<16x225xf32>
    %5 = vector.broadcast %1 : vector<16x1xf32> to vector<16x225xf32>
    %6 = arith.addf %4, %5 : vector<16x225xf32>
    %cst_6 = arith.constant 0.000000e+00 : f32
    %7 = vector.broadcast %cst_6 : f32 to vector<16x225xf32>
    %8 = arith.maximumf %6, %7 : vector<16x225xf32>
    %c0_7 = arith.constant 0 : index
    %c0_8 = arith.constant 0 : index
    %c0_9 = arith.constant 0 : index
    %9 = vector.load %arg3[%c0_7, %c0_8, %c0_9] : memref<2x16x225xf32, #tpu.memory_space<vmem>>, vector<1x16x225xf32>
    %10 = vector.shape_cast %9 : vector<1x16x225xf32> to vector<16x225xf32>
    %11 = vector.shape_cast %8 : vector<16x225xf32> to vector<1x16x225xf32>
    tpu.vector_store %arg3[%c0_7, %c0_8, %c0_9], %11 {strides = array<i32>} : memref<2x16x225xf32, #tpu.memory_space<vmem>>, vector<1x16x225xf32>,
    %c1 = arith.constant 1 : index
    %c0_10 = arith.constant 0 : index
    %c0_11 = arith.constant 0 : index
    %12 = vector.load %arg0[%c1, %c0_10, %c0_11] : memref<2x48x225xf32, #tpu.memory_space<vmem>>, vector<1x48x225xf32>
    %13 = vector.shape_cast %12 : vector<1x48x225xf32> to vector<48x225xf32>
    %cst_12 = arith.constant dense<0.000000e+00> : vector<16x225xf32>
    %14 = tpu.matmul %0, %13, %cst_12 {dimension_numbers = #tpu.dot_dimension_numbers<[1], [0], [0], [1], [0, 0, 1, 1], [], []>} : vector<16x48xf32>, vector<48x225xf32>, vector<16x225xf32> -> vector<16x225xf32>
    %15 = vector.broadcast %1 : vector<16x1xf32> to vector<16x225xf32>
    %16 = arith.addf %14, %15 : vector<16x225xf32>
    %cst_13 = arith.constant 0.000000e+00 : f32
    %17 = vector.broadcast %cst_13 : f32 to vector<16x225xf32>
    %18 = arith.maximumf %16, %17 : vector<16x225xf32>
    %c1_14 = arith.constant 1 : index
    %c0_15 = arith.constant 0 : index
    %c0_16 = arith.constant 0 : index
    %19 = vector.load %arg3[%c1_14, %c0_15, %c0_16] : memref<2x16x225xf32, #tpu.memory_space<vmem>>, vector<1x16x225xf32>
    %20 = vector.shape_cast %19 : vector<1x16x225xf32> to vector<16x225xf32>
    %21 = vector.shape_cast %18 : vector<16x225xf32> to vector<1x16x225xf32>
    tpu.vector_store %arg3[%c1_14, %c0_15, %c0_16], %21 {strides = array<i32>} : memref<2x16x225xf32, #tpu.memory_space<vmem>>, vector<1x16x225xf32>,
    return
  }
}

</mosaic_0001>

<bundles_post_ra>
// kernel: tpu_custom_call.1
= control target key start
LH: loop header
LB: loop body
LE: loop exit
PB: predicated region body
PF: predicated region fallthrough
CT: control target
= control target key end

     0   :  { %8 = vsyncpa [#allocation3], 0  ;;  %s419_s0 = inlined_call_operand.hbm [shape: f32[2,48,225], index: 0, kind: input, shape index: {}]   ;;  %s420_s1 = inlined_call_operand.vmem [shape: f32[16,48], index: 1, kind: input, shape index: {}]   ;;  %s421_s2 = inlined_call_operand.vmem [shape: f32[16,1], index: 2, kind: input, shape index: {}]   ;;  %s422_s3 = inlined_call_operand.hbm [shape: f32[2,16,225], index: 3, kind: output, shape index: {}]  }
   0x1   :  { %9 = vsyncpa [#allocation4], 0  ;;  %s347_s12 = smov [#allocation2]   ;;  %s299_s16 = scalar_lea.hbm %s419_s0, 3072 }
   0x2   :  { %s15_s13 = sshll.u32 %s347_s12, 4  ;;  %p300_p0 = scmp.ne.s32.totalorder %s419_s0, %s299_s16  ;;  %s16_s13 = int_to_ptr.vmem [resolvable:$true] %s15_s13 }
   0x3   :  { %p303_p1 = scmp.lt.u32.totalorder %s299_s16, %s419_s0 }
   0x5   :  { %p305_p2 = pnand %p303_p1, %p300_p0 }
   0x7   :  { %308 = shalt.err (!%p305_p2)
}
   0x8   :  { %s309_s21 = scalar_lea.vmem %s16_s13, 3072  ;;  %p314_p4 = scmp.lt.s32.totalorder %s16_s13, %s16_s13 }
   0x9   :  { %p310_p3 = scmp.ne.s32.totalorder %s16_s13, %s309_s21  ;;  %p315_p5 = scmp.lt.s32.totalorder %s309_s21, %s309_s21 }
   0xb   :  { %p316_p6 = por %p315_p5, %p314_p4 }
   0xd   :  { %p317_p7 = pnand %p316_p6, %p310_p3 }
   0xf   :  { %320 = shalt.err (!%p317_p7)
}
  0x10   :  { %s348_s22 = smov 256   ;;  %s349_s23 = smov 16  }
  0x11   :  { %21 = dma.hbm_to_vmem [thread:$0]  %s419_s0, 3072, %s16_s13, [#allocation3], %s348_s22, %s348_s22, %s349_s23  }
  0x12   :  { %343 = dma.done.wait [#allocation3], 3072  }
  0x13   :  { %344 = vsyncadd [#allocation3], 4294964224  ;;  %v350_v0 = vmov 0.0   ;;  %v351_v1 = vmov 0   ;;  %v34_v2 = vld [vmem:[#allocation2 + $0x8] sm:$0xff]  ;;  %v36_v3 = vld [vmem:[#allocation2 + $0x18] sm:$0xff] }
  0x14   :  { %126 = vmatprep.mubr.f32.mxu0 %v350_v0  ;;  %225 = vmatprep.mubr.f32.mxu1 %v350_v0  ;;  %v150_v4 = vld [vmem:[#allocation2 + $0x68] sm:$0xff]  ;;  %v268_v5 = vpack.c.bf16 %v36_v3, %v34_v2  ;;  %v152_v6 = vld [vmem:[#allocation2 + $0x78] sm:$0xff]  ;;  %v33_v7 = vld [vmem:[#allocation2] sm:$0xff]  ;;  %vm55_vm0 = vcmask 392192   ;;  %vm144_vm1 = vcmask 793600  }
  0x15   :  { %298 = vset.pattern.permute.xlu0 %v351_v1  ;;  %v35_v8 = vld [vmem:[#allocation2 + $0x10] sm:$0xff]  ;;  %v280_v9 = vpack.c.bf16 %v152_v6, %v150_v4  ;;  %v149_v11 = vld [vmem:[#allocation2 + $0x60] sm:$0xff]  ;;  %v38_v13 = vld [vmem:[#allocation2 + $0x28] sm:$0xff] }
  0x16   :  { %v270_v10 = vpack.c.bf16 %v35_v8, %v33_v7  ;;  %v151_v12 = vld [vmem:[#allocation2 + $0x70] sm:$0xff]  ;;  %269 = vmatprep.subr.bf16.mxu0 %v268_v5  ;;  %v40_v15 = vld [vmem:[#allocation2 + $0x38] sm:$0xff]  ;;  %v154_v16 = vld [vmem:[#allocation2 + $0x88] sm:$0xff] }
  0x17   :  { %v282_v14 = vpack.c.bf16 %v151_v12, %v149_v11  ;;  %v156_v17 = vld [vmem:[#allocation2 + $0x98] sm:$0xff]  ;;  %281 = vmatprep.subr.bf16.mxu1 %v280_v9  ;;  %v272_v18 = vpack.c.bf16 %v40_v15, %v38_v13  ;;  %v37_v20 = vld [vmem:[#allocation2 + $0x20] sm:$0xff]  ;;  %v39_v21 = vld [vmem:[#allocation2 + $0x30] sm:$0xff] }
  0x18   :  { %271 = vmatpush1.bf16.msra.mxu0 %v270_v10  ;;  %v284_v19 = vpack.c.bf16 %v156_v17, %v154_v16  ;;  %v153_v22 = vld [vmem:[#allocation2 + $0x80] sm:$0xff]  ;;  %v274_v23 = vpack.c.bf16 %v39_v21, %v37_v20  ;;  %v155_v24 = vld [vmem:[#allocation2 + $0x90] sm:$0xff]  ;;  %v42_v25 = vld [vmem:[#allocation2 + $0x48] sm:$0xff] }
  0x19   :  { %283 = vmatpush1.bf16.msra.mxu1 %v282_v14  ;;  %v44_v26 = vld [vmem:[#allocation2 + $0x58] sm:$0xff]  ;;  %273 = vmatprep.subr.bf16.mxu0 %v272_v18  ;;  %v286_v27 = vpack.c.bf16 %v155_v24, %v153_v22  ;;  %v158_v29 = vld [vmem:[#allocation2 + $0xa8] sm:$0xff]  ;;  %v41_v31 = vld [vmem:[#allocation2 + $0x40] sm:$0xff] }
  0x1a   :  { %285 = vmatprep.subr.bf16.mxu1 %v284_v19  ;;  %v276_v28 = vpack.c.bf16 %v44_v26, %v42_v25  ;;  %v160_v30 = vld [vmem:[#allocation2 + $0xb8] sm:$0xff]  ;;  %v43_v33 = vld [vmem:[#allocation2 + $0x50] sm:$0xff]  ;;  %v157_v34 = vld [vmem:[#allocation2 + $0xa0] sm:$0xff] }
  0x1b   :  { %v288_v32 = vpack.c.bf16 %v160_v30, %v158_v29  ;;  %v159_v35 = vld [vmem:[#allocation2 + $0xb0] sm:$0xff]  ;;  %v278_v36 = vpack.c.bf16 %v43_v33, %v41_v31  ;;  %v31_v37 = vld [vmem:[%s421_s2] sm:$0xff]  ;;  %v32_v39 = vld [vmem:[%s421_s2 + $0x8] sm:$0xff] }
  0x1c   :  { %275 = vmatpush1.bf16.msra.mxu0 %v274_v23  ;;  %v290_v38 = vpack.c.bf16 %v159_v35, %v157_v34  ;;  %47 = vperm.xlu0 %298, %v31_v37   ;;  %v29_v40 = vld [vmem:[%s420_s1] sm:$0xff]  ;;  %v30_v41 = vld [vmem:[%s420_s1 + $0x8] sm:$0xff]  ;;  %s352_s1 = smov [#allocation5]  }
  0x1d   :  { %287 = vmatpush1.bf16.msra.mxu1 %v286_v27  ;;  %277 = vmatprep.subr.bf16.mxu0 %v276_v28  ;;  %s252_s2 = sshll.u32 %s352_s1, 4  ;;  %s253_s2 = int_to_ptr.vmem [resolvable:$true] %s252_s2 }
  0x1e   :  { %289 = vmatprep.subr.bf16.mxu1 %v288_v32  ;;  %s321_s6 = scalar_lea.vmem %s253_s2, 1024  ;;  %p326_p9 = scmp.lt.s32.totalorder %s253_s2, %s253_s2 }
  0x1f   :  { %p322_p8 = scmp.ne.s32.totalorder %s253_s2, %s321_s6  ;;  %p327_p10 = scmp.lt.s32.totalorder %s321_s6, %s321_s6 }
  0x20   :  { %279 = vmatpush1.bf16.msra.mxu0 %v278_v36  ;;  %52 = vperm.xlu0 %298, %v32_v39  }
  0x21   :  { %291 = vmatpush1.bf16.msra.mxu1 %v290_v38  ;;  %p328_p11 = por %p327_p10, %p326_p9 }
  0x23   :  { %264 = vmatmul.mubr.msk.f32.vlgmr.msra.gmra.mrb[0].mxu0 %vm55_vm0, %v29_v40  ;;  %p329_p12 = pnand %p328_p11, %p322_p8 }
  0x24   :  { %266 = vmatmul.mubr.msk.f32.vlgmr.msra.gmra.mrb[0].mxu1 %vm55_vm0, %v29_v40  ;;  %132 = vmatprep.mubr.f32.mxu0 %v350_v0 }
  0x25   :  { %231 = vmatprep.mubr.f32.mxu1 %v350_v0 }
  0x27   :  { %265 = vmatmul.mubr.msk.f32.gmra.mrb[2].mxu0 %vm55_vm0, %v30_v41 }
  0x28   :  { %267 = vmatmul.mubr.msk.f32.gmra.mrb[2].mxu1 %vm55_vm0, %v30_v41 }
  0x9b   :  { %v48_v42 = vpop.permute.xlu0 %47 }
  0x9f   :  { %v53_v53 = vpop.permute.xlu0 %52 }
  0xf6   :  { %v128_v43 = vpop.f32.mrb[0].mxu0 }
  0xf7   :  { %v129_v44 = vadd.f32 %v128_v43, %v48_v42  ;;  %v227_v45 = vpop.f32.mrb[0].mxu1  ;;  %v130_v46 = vpop.f32.mrb[1].mxu0 }
  0xf8   :  { %v228_v47 = vadd.f32 %v227_v45, %v48_v42  ;;  %v131_v48 = vadd.f32 %v130_v46, %v48_v42  ;;  %v229_v49 = vpop.f32.mrb[1].mxu1 }
  0xf9   :  { %v139_v50 = vmax.f32 %v129_v44, 0.0  ;;  %v230_v51 = vadd.f32 %v229_v49, %v48_v42 }
  0xfa   :  { %v238_v52 = vmax.f32 %v228_v47, 0.0  ;;  %v140_v54 = vmax.f32 %v131_v48, 0.0  ;;  %v134_v55 = vpop.f32.mrb[2].mxu0 }
  0xfb   :  { %143 = vst [vmem:[#allocation5] sm:$0xff] %v139_v50  ;;  %v239_v56 = vmax.f32 %v230_v51, 0.0  ;;  %v135_v57 = vadd.f32 %v134_v55, %v53_v53  ;;  %v233_v58 = vpop.f32.mrb[2].mxu1  ;;  %v136_v59 = vpop.f32.mrb[3].mxu0 }
  0xfc   :  { %243 = vst [vmem:[#allocation5 + $0x20] sm:$0xff] %v238_v52  ;;  %145 = vst.msk [vmem:[#allocation5 + $0x8] sm:$0xff] %vm144_vm1, %v140_v54  ;;  %v234_v60 = vadd.f32 %v233_v58, %v53_v53  ;;  %v137_v61 = vadd.f32 %v136_v59, %v53_v53  ;;  %v235_v62 = vpop.f32.mrb[3].mxu1 }
  0xfd   :  { %244 = vst.msk [vmem:[#allocation5 + $0x28] sm:$0xff] %vm144_vm1, %v239_v56  ;;  %v141_v63 = vmax.f32 %v135_v57, 0.0  ;;  %v236_v0 = vadd.f32 %v235_v62, %v53_v53 }
  0xfe   :  { %v240_v1 = vmax.f32 %v234_v60, 0.0  ;;  %v142_v2 = vmax.f32 %v137_v61, 0.0 }
  0xff   :  { %146 = vst [vmem:[#allocation5 + $0x10] sm:$0xff] %v141_v63  ;;  %v241_v3 = vmax.f32 %v236_v0, 0.0 }
 0x100   :  { %245 = vst [vmem:[#allocation5 + $0x30] sm:$0xff] %v240_v1  ;;  %147 = vst.msk [vmem:[#allocation5 + $0x18] sm:$0xff] %vm144_vm1, %v142_v2 }
 0x101   :  { %246 = vst.msk [vmem:[#allocation5 + $0x38] sm:$0xff] %vm144_vm1, %v241_v3 }
 0x102   :  { %332 = shalt.err (!%p329_p12)
}
 0x103   :  { %s333_s9 = scalar_lea.hbm %s422_s3, 1024 }
 0x104   :  { %p334_p13 = scmp.ne.s32.totalorder %s422_s3, %s333_s9  ;;  %p337_p0 = scmp.lt.u32.totalorder %s333_s9, %s422_s3 }
 0x106   :  { %p339_p1 = pnand %p337_p0, %p334_p13 }
 0x108   :  { %342 = shalt.err (!%p339_p1)
}
 0x109   :  { %258 = dma.vmem_to_hbm [thread:$0]  %s253_s2, 1024, %s422_s3, [#allocation4], %s348_s22, %s348_s22, %s349_s23  }
 0x10a   :  { %345 = dma.done.wait [#allocation4], 1024  }
 0x10b   :  { %346 = vsyncadd [#allocation4], 4294966272 }
 0x10c   :  { %262 = vsyncpa [#allocation3], 1 }
 0x10d   :  { %263 = vsyncpa [#allocation4], 1 }

</bundles_post_ra>
